<compile_context>
chip_gen: v7x
topology: tpu7x:2x2x1
jax: 0.10.0
libtpu: 0.0.40
codegen_flags: <defaults>
</compile_context>

<pallas_src>
import functools

import jax
import jax.numpy as jnp
from jax.experimental import pallas as pl
from jax.experimental.pallas import tpu as pltpu

ALPHA = 1.0
GAMMA = 2  # fixed at 2 -> implemented as an explicit square inside the kernel


def _focal_loss_kernel(logits_ref, targets_ref, out_ref, *, n_valid):
    """Per-tile partial sum of focal losses for one (tile_n, C) logits tile."""
    logits = logits_ref[...].astype(jnp.float32)           # (tile_n, C) f32
    tgt = targets_ref[...]                                  # (tile_n, 1) int32
    tn, c = logits.shape

    # one-hot "gather" of the target logit (compare + masked sum, no gather op)
    class_ids = jax.lax.broadcasted_iota(jnp.int32, (tn, c), 1)
    onehot = (class_ids == tgt).astype(jnp.float32)         # (tile_n, C)

    # numerically-stable softmax cross entropy: ce = logsumexp(x) - x[target]
    m = jnp.max(logits, axis=-1, keepdims=True)              # (tile_n, 1)
    lse = m + jnp.log(jnp.sum(jnp.exp(logits - m), axis=-1, keepdims=True))
    tgt_logit = jnp.sum(logits * onehot, axis=-1, keepdims=True)

    ce = lse - tgt_logit                                      # (tile_n, 1)
    pt = jnp.exp(tgt_logit - lse)                             # == exp(-ce)
    w = 1.0 - pt
    focal = (ALPHA * ce) * (w * w)                            # gamma=2 -> exact VPU square

    # Select-mask rows past the real batch (last tile reads OOB / undefined
    # data since the input is NOT padded).  Must happen before the reduction.
    if n_valid % tn != 0:
        row0 = pl.program_id(0) * tn
        row_ids = row0 + jax.lax.broadcasted_iota(jnp.int32, (tn, 1), 0)
        focal = jnp.where(row_ids < n_valid, focal, 0.0)

    # Lane-dense per-tile partial: one full unmasked vreg store per tile.
    partial = jnp.sum(focal)
    out_ref[...] = jnp.broadcast_to(partial, (1, 8, 128)).astype(jnp.float32)


def _round_up(x: int, m: int) -> int:
    return ((x + m - 1) // m) * m


def _choose_tile_n(n: int, c: int, itemsize: int) -> int:
    """Row-tile size: large (HBM-roofline) tiles, VMEM-budgeted with lane padding."""
    align = 16 if itemsize < 4 else 8                # bf16 packs 16 rows / sublane tile
    lane_c = _round_up(c, 128)
    # VMEM bytes per row per pipeline buffer: lane-padded logits block plus the
    # (tile_n, 1) int32 targets block (lane-padded to 128).
    row_bytes = itemsize * lane_c + 4 * 128
    budget_per_buffer = 8 * 1024 * 1024              # ~16 MiB total when double-buffered
    rows = budget_per_buffer // max(1, row_bytes)
    rows = max(align, min(8192, (rows // align) * align))
    rows = min(rows, _round_up(n, align))            # never exceed the (aligned) batch

    # Megacore: v7x shards the "parallel" grid axis across 2 TensorCores.
    # Prefer >= 4 tiles for big batches (keeping tiles >= 512 rows so the
    # ~0.35us per-grid-step overhead stays amortized), and >= 2 tiles otherwise.
    if n >= 4 * 512:
        rows = min(rows, max(512, _round_up(pl.cdiv(n, 4), align)))
    elif pl.cdiv(n, rows) < 2 and n > 2 * align:
        rows = _round_up(pl.cdiv(n, 2), align)
    return rows


def focal_loss(logits: jax.Array, targets: jax.Array) -> jax.Array:
    """logits: [N, C] float (f32 or bf16), targets: [N] int class indices.

    Returns the scalar mean focal loss (alpha=1, gamma=2), matching the
    PyTorch FocalLoss module with reduction='mean'.
    """
    n, c = logits.shape
    itemsize = jnp.dtype(logits.dtype).itemsize
    tile_n = _choose_tile_n(n, c, itemsize)
    num_tiles = pl.cdiv(n, tile_n)

    targets2d = targets.astype(jnp.int32).reshape(n, 1)     # tiny (N*4 B) reshape

    kernel = functools.partial(_focal_loss_kernel, n_valid=n)

    # Explicit scoped-VMEM limit: actual need is ~2 pipeline buffers of
    # (lane-padded logits + lane-padded targets) + the tiny output block.
    lane_c = _round_up(c, 128)
    buf_bytes = tile_n * (itemsize * lane_c + 4 * 128) + 8 * 128 * 4
    vmem_limit = int(min(48 * 1024 * 1024,                   # v7x-safe (64 MiB/TC physical)
                         max(32 * 1024 * 1024, 3 * buf_bytes)))

    partials = pl.pallas_call(
        kernel,
        out_shape=jax.ShapeDtypeStruct((num_tiles, 8, 128), jnp.float32),
        grid=(num_tiles,),
        in_specs=[
            pl.BlockSpec((tile_n, c), lambda i: (i, 0)),     # logits tile
            pl.BlockSpec((tile_n, 1), lambda i: (i, 0)),     # targets tile
        ],
        out_specs=pl.BlockSpec((1, 8, 128), lambda i: (i, 0, 0)),
        compiler_params=pltpu.CompilerParams(
            dimension_semantics=("parallel",),               # v7x: both TCs stream tiles
            vmem_limit_bytes=vmem_limit,
        ),
    )(logits, targets2d)

    # reduction='mean' over the N real rows (OOB rows were select-masked in-kernel).
    return jnp.sum(partials[:, 0, 0]) / jnp.float32(n)


def _focal_loss_ref(logits, targets):
    # pure-JAX reference for verification
    logits = logits.astype(jnp.float32)
    lse = jax.nn.logsumexp(logits, axis=-1)
    tgt_logit = jnp.take_along_axis(
        logits, targets[:, None].astype(jnp.int32), axis=-1)[:, 0]
    ce = lse - tgt_logit
    pt = jnp.exp(-ce)
    return jnp.mean(ALPHA * (1.0 - pt) ** GAMMA * ce)


if __name__ == "__main__":
    key = jax.random.PRNGKey(0)
    k1, k2, k3, k4, k5, k6 = jax.random.split(key, 6)

    # case 1: tiny classification head, f32 (batch=8, classes=32)
    N, C = 8, 32
    logits = jax.random.normal(k1, (N, C), dtype=jnp.float32)
    targets = jax.random.randint(k2, (N,), 0, C, dtype=jnp.int32)
    out = jax.block_until_ready(focal_loss(logits, targets))
    ref = _focal_loss_ref(logits, targets)
    assert jnp.allclose(out, ref, atol=1e-5, rtol=1e-5), (out, ref)

    # case 2: N not a tile multiple -> 2 tiles, last tile has OOB rows (no padding)
    N2, C2 = 300, 100
    logits2 = jax.random.normal(k3, (N2, C2), dtype=jnp.float32)
    targets2 = jax.random.randint(k4, (N2,), 0, C2, dtype=jnp.int32)
    out2 = jax.block_until_ready(focal_loss(logits2, targets2))
    ref2 = _focal_loss_ref(logits2, targets2)
    assert jnp.allclose(out2, ref2, atol=1e-5, rtol=1e-5), (out2, ref2)

    # case 3: bf16 logits (halves HBM traffic; kernel upcasts to f32 internally)
    N3, C3 = 64, 100
    logits3 = jax.random.normal(k5, (N3, C3), dtype=jnp.float32).astype(jnp.bfloat16)
    targets3 = jax.random.randint(k6, (N3,), 0, C3, dtype=jnp.int32)
    out3 = jax.block_until_ready(focal_loss(logits3, targets3))
    ref3 = _focal_loss_ref(logits3, targets3)
    assert jnp.allclose(out3, ref3, atol=1e-4, rtol=1e-4), (out3, ref3)

    print("KERNEL_OK")
</pallas_src>

<mosaic_0001>
module attributes {stable_mosaic.version = 11 : i64} {
  func.func @_focal_loss_kernel(%arg0: i32, %arg1: memref<8x32xf32, #tpu.memory_space<vmem>>, %arg2: memref<8x1xi32, #tpu.memory_space<vmem>>, %arg3: memref<1x8x128xf32, #tpu.memory_space<vmem>>) attributes {dimension_semantics = [#tpu.dimension_semantics<parallel>], iteration_bounds = array<i64: 1>, scalar_prefetch = 0 : i64, scratch_operands = 0 : i64, tpu.core_type = #tpu.core_type<tc>, window_params = [{transform_indices = @transform_0, window_bounds = array<i64: 8, 32>}, {transform_indices = @transform_1, window_bounds = array<i64: 8, 1>}, {transform_indices = @transform_2, window_bounds = array<i64: 1, 8, 128>}]} {
    %c0 = arith.constant 0 : index
    %c0_0 = arith.constant 0 : index
    %0 = vector.load %arg1[%c0, %c0_0] : memref<8x32xf32, #tpu.memory_space<vmem>>, vector<8x32xf32>
    %c0_1 = arith.constant 0 : index
    %c0_2 = arith.constant 0 : index
    %1 = vector.load %arg2[%c0_1, %c0_2] : memref<8x1xi32, #tpu.memory_space<vmem>>, vector<8x1xi32>
    %2 = tpu.iota {dimensions = array<i32: 1>} : vector<8x32xi32>
    %3 = vector.broadcast %1 : vector<8x1xi32> to vector<8x32xi32>
    %4 = arith.cmpi eq, %2, %3 : vector<8x32xi32>
    %5 = arith.extui %4 : vector<8x32xi1> to vector<8x32xi32>
    %6 = arith.sitofp %5 : vector<8x32xi32> to vector<8x32xf32>
    %cst = arith.constant dense<0xFF800000> : vector<8xf32>
    %7 = vector.multi_reduction <maximumf>, %0, %cst [1] : vector<8x32xf32> to vector<8xf32>
    %8 = vector.shape_cast %7 : vector<8xf32> to vector<8x1xf32>
    %9 = vector.broadcast %8 : vector<8x1xf32> to vector<8x32xf32>
    %10 = arith.subf %0, %9 : vector<8x32xf32>
    %11 = math.exp %10 : vector<8x32xf32>
    %cst_3 = arith.constant dense<0.000000e+00> : vector<8xf32>
    %12 = vector.multi_reduction <add>, %11, %cst_3 [1] : vector<8x32xf32> to vector<8xf32>
    %13 = vector.shape_cast %12 : vector<8xf32> to vector<8x1xf32>
    %14 = math.log %13 : vector<8x1xf32>
    %15 = arith.addf %8, %14 : vector<8x1xf32>
    %16 = arith.mulf %0, %6 : vector<8x32xf32>
    %cst_4 = arith.constant dense<0.000000e+00> : vector<8xf32>
    %17 = vector.multi_reduction <add>, %16, %cst_4 [1] : vector<8x32xf32> to vector<8xf32>
    %18 = vector.shape_cast %17 : vector<8xf32> to vector<8x1xf32>
    %19 = arith.subf %15, %18 : vector<8x1xf32>
    %20 = arith.subf %18, %15 : vector<8x1xf32>
    %21 = math.exp %20 : vector<8x1xf32>
    %cst_5 = arith.constant 1.000000e+00 : f32
    %22 = vector.broadcast %cst_5 : f32 to vector<8x1xf32>
    %23 = arith.subf %22, %21 : vector<8x1xf32>
    %cst_6 = arith.constant 1.000000e+00 : f32
    %24 = vector.broadcast %cst_6 : f32 to vector<8x1xf32>
    %25 = arith.mulf %24, %19 : vector<8x1xf32>
    %26 = arith.mulf %23, %23 : vector<8x1xf32>
    %27 = arith.mulf %25, %26 : vector<8x1xf32>
    %28 = vector.shape_cast %27 : vector<8x1xf32> to vector<1x8x1xf32>
    %cst_7 = arith.constant dense<0.000000e+00> : vector<1xf32>
    %29 = vector.multi_reduction <add>, %28, %cst_7 [1, 2] : vector<1x8x1xf32> to vector<1xf32>
    %30 = vector.shape_cast %29 : vector<1xf32> to vector<1x1x1xf32>
    %31 = vector.extract %30[0, 0, 0] : f32 from vector<1x1x1xf32>
    %32 = vector.broadcast %31 : f32 to vector<1x8x128xf32>
    %c0_8 = arith.constant 0 : index
    %c0_9 = arith.constant 0 : index
    %c0_10 = arith.constant 0 : index
    %33 = vector.load %arg3[%c0_8, %c0_9, %c0_10] : memref<1x8x128xf32, #tpu.memory_space<vmem>>, vector<1x8x128xf32>
    tpu.vector_store %arg3[%c0_8, %c0_9, %c0_10], %32 {strides = array<i32>} : memref<1x8x128xf32, #tpu.memory_space<vmem>>, vector<1x8x128xf32>,
    return
  }
  func.func @transform_0(%arg0: i32) -> (i32, i32) {
    %c0_i32 = arith.constant 0 : i32
    %c0_i32_0 = arith.constant 0 : i32
    return %arg0, %c0_i32 : i32, i32
  }
  func.func @transform_1(%arg0: i32) -> (i32, i32) {
    %c0_i32 = arith.constant 0 : i32
    %c0_i32_0 = arith.constant 0 : i32
    return %arg0, %c0_i32 : i32, i32
  }
  func.func @transform_2(%arg0: i32) -> (i32, i32, i32) {
    %c0_i32 = arith.constant 0 : i32
    %c0_i32_0 = arith.constant 0 : i32
    %c0_i32_1 = arith.constant 0 : i32
    return %arg0, %c0_i32, %c0_i32_0 : i32, i32, i32
  }
}

</mosaic_0001>

<bundles_post_ra>
// kernel: tpu_custom_call.1
= control target key start
LH: loop header
LB: loop body
LE: loop exit
PB: predicated region body
PF: predicated region fallthrough
CT: control target
= control target key end

     0   :  { %vm22_vm0 = vcmask 261120   ;;  %s149_s0 = inlined_call_operand.vmem [shape: f32[8,32], index: 0, kind: input, shape index: {}]   ;;  %s150_s1 = inlined_call_operand.vmem [shape: s32[8,1], index: 1, kind: input, shape index: {}]   ;;  %s151_s2 = inlined_call_operand.hbm [shape: f32[1,8,128], index: 2, kind: output, shape index: {}]  }
   0x1   :  { %v12_v0 = vld [vmem:[%s149_s0] sm:$0xff] }
   0x2   :  { %7 = vsyncpa [#allocation3], 0  ;;  %v23_v1 = vsel %vm22_vm0, %v12_v0, -inf  ;;  %v110_v2 = vmov 0   ;;  %v13_v3 = vld [vmem:[%s150_s1] sm:$0xff]  ;;  %v14_v6 = vlaneseq  ;;  %v111_v10 = vmov 0.0  }
   0x3   :  { %79 = vset.pattern.permute.xlu0 %v110_v2  ;;  %vm46_vm2 = vcmask 7168   ;;  %s112_s0 = smov [#allocation2]  }
   0x4   :  { %24 = vmax.xlane.f32.xlu0 %v23_v1  ;;  %v15_v8 = vand.u32 127, %v14_v6  ;;  %s65_s1 = sshll.u32 %s112_s0, 4  ;;  %s66_s1 = int_to_ptr.vmem [resolvable:$true] %s65_s1 }
   0x5   :  { %s86_s14 = scalar_lea.vmem %s66_s1, 128  ;;  %p91_p1 = scmp.lt.s32.totalorder %s66_s1, %s66_s1 }
   0x6   :  { %p87_p0 = scmp.ne.s32.totalorder %s66_s1, %s86_s14  ;;  %p92_p2 = scmp.lt.s32.totalorder %s86_s14, %s86_s14 }
   0x8   :  { %p93_p3 = por %p92_p2, %p91_p1 }
   0xa   :  { %p94_p4 = pnand %p93_p3, %p87_p0 }
  0x1a   :  { %17 = vperm.xlu0 %79, %v13_v3  }
  0x91   :  { %v25_v4 = vpop.xlane.xlu0 %24 }
  0x92   :  { %v26_v5 = vsub.f32 %v12_v0, %v25_v4 }
  0x94   :  { %v27_v7 = vmul.f32 1.442695, %v26_v5 }
  0x96   :  { %80 = vpow2.f32 %v27_v7 }
  0x99   :  { %v18_v9 = vpop.permute.xlu0 %17 }
  0x9a   :  { %vm19_vm1 = vcmp.eq.s32.totalorder %v15_v8, %v18_v9 }
  0x9b   :  { %v73_v11 = vsel %vm19_vm1, 1.0, %v111_v10 }
  0x9c   :  { %v35_v12 = vmul.f32 %v73_v11, %v12_v0 }
  0x9e   :  { %v36_v15 = vsel %vm22_vm0, %v35_v12, 0.0 }
  0xa0   :  { %v81_v13 = vpop.eup %80 }
  0xa1   :  { %v29_v14 = vsel %vm22_vm0, %v81_v13, 0.0 }
  0xa2   :  { %30 = vadd.xlane.f32.xlu1 %v29_v14 }
  0xa6   :  { %37 = vadd.xlane.f32.xlu1 %v36_v15 }
 0x12f   :  { %v31_v16 = vpop.xlane.xlu1 %30 }
 0x130   :  { %82 = vlog2.f32 %v31_v16 }
 0x133   :  { %v38_v19 = vpop.xlane.xlu1 %37 }
 0x13a   :  { %v83_v17 = vpop.eup %82 }
 0x13b   :  { %v33_v18 = vmul.f32 0.6931472, %v83_v17 }
 0x13d   :  { %v34_v20 = vadd.f32 %v33_v18, %v25_v4 }
 0x13f   :  { %v40_v21 = vsub.f32 %v38_v19, %v34_v20  ;;  %v39_v25 = vsub.f32 %v34_v20, %v38_v19 }
 0x141   :  { %v41_v22 = vmul.f32 1.442695, %v40_v21 }
 0x143   :  { %84 = vpow2.f32 %v41_v22 }
 0x14d   :  { %v85_v23 = vpop.eup %84 }
 0x14e   :  { %v43_v24 = vsub.f32 1.0, %v85_v23 }
 0x150   :  { %v44_v26 = vmul.f32 %v43_v24, %v43_v24 }
 0x152   :  { %v45_v27 = vmul.f32 %v44_v26, %v39_v25 }
 0x154   :  { %v47_v28 = vsel %vm46_vm2, %v45_v27, 0.0 }
 0x155   :  { %48 = vadd.xlane.f32.xlu1 %v47_v28 }
 0x1e2   :  { %v49_v29 = vpop.xlane.xlu1 %48 }
 0x1e3   :  { %v50_v30 = vrot.slane %v49_v29, 4 }
 0x1e5   :  { %v51_v31 = vadd.f32 %v50_v30, %v49_v29 }
 0x1e7   :  { %v52_v32 = vrot.slane %v51_v31, 2 }
 0x1e9   :  { %v53_v33 = vadd.f32 %v52_v32, %v51_v31 }
 0x1eb   :  { %v54_v34 = vrot.slane %v53_v33, 1 }
 0x1ed   :  { %v55_v35 = vadd.f32 %v54_v34, %v53_v33 }
 0x1ef   :  { %74 = vpush %v55_v35 }
 0x220   :  { %s75_s13 = spop %74 }
 0x221   :  { %v57_v36 = vstv %s75_s13 }
 0x222   :  { %58 = vst [vmem:[#allocation2] sm:$0xff] %v57_v36 }
 0x223   :  { %97 = shalt.err (!%p94_p4)
}
 0x224   :  { %s98_s17 = scalar_lea.hbm %s151_s2, 128 }
 0x225   :  { %p99_p5 = scmp.ne.s32.totalorder %s151_s2, %s98_s17  ;;  %p102_p6 = scmp.lt.u32.totalorder %s98_s17, %s151_s2 }
 0x227   :  { %p104_p7 = pnand %p102_p6, %p99_p5 }
 0x229   :  { %107 = shalt.err (!%p104_p7)
}
 0x22a   :  { %68 = dma.vmem_to_hbm [thread:$0]  %s66_s1, 128, %s151_s2, [#allocation3]  }
 0x22b   :  { %108 = dma.done.wait [#allocation3], 128  }
 0x22c   :  { %109 = vsyncadd [#allocation3], 4294967168 }
 0x22d   :  { %72 = vsyncpa [#allocation3], 1 }

</bundles_post_ra>
